<compile_context>
chip_gen: v7x
topology: tpu7x:2x2x1
jax: 0.10.0
libtpu: 0.0.40
codegen_flags: <defaults>
</compile_context>

<pallas_src>
import functools
import math

import jax
import jax.numpy as jnp
import numpy as np
from jax.experimental import pallas as pl
from jax.experimental.pallas import tpu as pltpu


def _transfor_kernel(xp_ref, wt_ref, o_ref):
    # xp_ref: (B, H+2, (W+2)*Cin)   pre-padded, lane-packed input block
    # wt_ref: (3, (W+2)*Cin, W*Cout) block-Toeplitz folded conv weights
    # o_ref : (B, H, W*Cout)         lane-dense output block
    B, hp2, L = xp_ref.shape
    H = hp2 - 2
    nout = o_ref.shape[-1]

    # kh = 0 tap initializes the accumulator (avoids a zero-fill + extra add).
    acc = jnp.dot(xp_ref[:, 0:H, :].reshape(B * H, L), wt_ref[0],
                  preferred_element_type=jnp.float32)
    for kh in (1, 2):
        lhs = xp_ref[:, kh:kh + H, :].reshape(B * H, L)
        acc = acc + jnp.dot(lhs, wt_ref[kh],
                            preferred_element_type=jnp.float32)

    o_ref[...] = acc.reshape(B, H, nout).astype(o_ref.dtype)


def _build_toeplitz_weights(w1_oihw, w2_oihw, W, dtype):
    """Fold conv1 into conv2 and build per-kh block-Toeplitz matrices.

    Returns wt of shape (3, (W+2)*Cin, W*Cout) with
      wt[kh, q*Cin + c, w*Cout + o] = w_eff[kh, q - w, c, o]  if 0 <= q-w <= 2
                                    = 0                        otherwise
    so that  y[b,h,w*Cout+o] = sum_kh  x_pad[b, h+kh, :] @ wt[kh].
    """
    Cin = w1_oihw.shape[1]
    Cout = w2_oihw.shape[0]

    # w_eff[kh, kw, c, o] = sum_m w1[m, c] * w2[o, m, kh, kw]   (3, 3, Cin, Cout)
    w_eff = jnp.einsum("mc,omhw->hwco", w1_oihw[:, :, 0, 0], w2_oihw,
                       precision=jax.lax.Precision.HIGHEST)

    p = jnp.arange(W + 2)[:, None]          # padded input column q
    wcol = jnp.arange(W)[None, :]           # output column w
    d = p - wcol                            # == kw when valid
    valid = (d >= 0) & (d <= 2)
    dc = jnp.clip(d, 0, 2)

    big = w_eff[:, dc]                                   # (3, W+2, W, Cin, Cout)
    big = big * valid[None, :, :, None, None].astype(big.dtype)
    big = jnp.transpose(big, (0, 1, 3, 2, 4))            # (3, W+2, Cin, W, Cout)
    return big.reshape(3, (W + 2) * Cin, W * Cout).astype(dtype)


def _pick_block_n(N, H, W, Cin, Cout, itemsize, budget_bytes=4 << 20):
    """Largest divisor of N whose double-buffered in+out blocks fit the budget,
    keeping >= 2 grid steps when possible (v7x has 2 TensorCores)."""
    per_img = ((H + 2) * (W + 2) * Cin + H * W * Cout) * itemsize
    best = 1
    for b in range(1, N + 1):
        if N % b:
            continue
        if 2 * b * per_img > budget_bytes:      # double-buffered input + output
            continue
        if N >= 2 and N // b < 2:               # keep both v7x TCs busy
            continue
        best = b
    return best


@functools.partial(jax.jit, static_argnames=("block_n",))
def transfor_forward(x_nchw, w1_oihw, w2_oihw, block_n=None):
    """x_nchw: (N, Cin, H, W); w1: (Cm, Cin, 1, 1); w2: (Cout, Cm, 3, 3).
    Returns y in NCHW: (N, Cout, H, W) -- matches the PyTorch module."""
    N, Cin, H, W = x_nchw.shape
    Cout = w2_oihw.shape[0]
    dtype = x_nchw.dtype
    L = (W + 2) * Cin
    NOUT = W * Cout

    wt = _build_toeplitz_weights(w1_oihw, w2_oihw, W, dtype)

    # NCHW -> zero-padded, lane-packed (N, H+2, (W+2)*Cin).  One fused XLA
    # transpose+pad+reshape; the NCHW public API (PyTorch spec) requires it.
    x_nhwc = jnp.transpose(x_nchw, (0, 2, 3, 1))
    xp = jnp.pad(x_nhwc, ((0, 0), (1, 1), (1, 1), (0, 0)))
    xp = xp.reshape(N, H + 2, L)

    if block_n is None:
        block_n = _pick_block_n(N, H, W, Cin, Cout, jnp.dtype(dtype).itemsize)
    grid = (N // block_n,)

    out_packed = pl.pallas_call(
        _transfor_kernel,
        out_shape=jax.ShapeDtypeStruct((N, H, NOUT), dtype),
        grid_spec=pltpu.PrefetchScalarGridSpec(
            num_scalar_prefetch=0,
            grid=grid,
            in_specs=[
                pl.BlockSpec((block_n, H + 2, L), lambda n: (n, 0, 0)),
                pl.BlockSpec((3, L, NOUT), lambda n: (0, 0, 0)),
            ],
            out_specs=pl.BlockSpec((block_n, H, NOUT), lambda n: (n, 0, 0)),
        ),
        compiler_params=pltpu.CompilerParams(
            dimension_semantics=("parallel",)),
    )(xp, wt)

    # (N, H, W*Cout) -> NCHW
    y = out_packed.reshape(N, H, W, Cout)
    return jnp.transpose(y, (0, 3, 1, 2))


def _kaiming_uniform(key, shape, a=1.0):
    # PyTorch kaiming_uniform_ with a=1: gain = sqrt(2/(1+a^2)), fan_in = Cin*kh*kw
    fan_in = shape[1] * shape[2] * shape[3]
    gain = math.sqrt(2.0 / (1.0 + a * a))
    bound = gain * math.sqrt(3.0 / fan_in)
    return jax.random.uniform(key, shape, jnp.float32, -bound, bound)


def _reference(x_nchw, w1_oihw, w2_oihw):
    # pure-JAX reference using lax.conv (NCHW / OIHW, like PyTorch)
    mid = jax.lax.conv_general_dilated(
        x_nchw, w1_oihw, window_strides=(1, 1), padding="VALID",
        dimension_numbers=("NCHW", "OIHW", "NCHW"),
        precision=jax.lax.Precision.HIGHEST)
    y = jax.lax.conv_general_dilated(
        mid, w2_oihw, window_strides=(1, 1), padding=((1, 1), (1, 1)),
        dimension_numbers=("NCHW", "OIHW", "NCHW"),
        precision=jax.lax.Precision.HIGHEST)
    return y


if __name__ == "__main__":
    key = jax.random.PRNGKey(0)
    k_x, k_w1, k_w2 = jax.random.split(key, 3)

    N, Cin, H, W = 2, 4, 16, 16
    Cm, Cout = 8, 16

    x = jax.random.normal(k_x, (N, Cin, H, W), jnp.float32)
    w1 = _kaiming_uniform(k_w1, (Cm, Cin, 1, 1), a=1.0)
    w2 = _kaiming_uniform(k_w2, (Cout, Cm, 3, 3), a=1.0)

    y = transfor_forward(x, w1, w2)
    y = jax.block_until_ready(y)

    y_ref = jax.block_until_ready(_reference(x, w1, w2))
    np.testing.assert_allclose(np.asarray(y), np.asarray(y_ref),
                               rtol=2e-4, atol=2e-4)
    print("KERNEL_OK")
</pallas_src>

<mosaic_0001>
module attributes {stable_mosaic.version = 11 : i64} {
  func.func @_transfor_kernel(%arg0: i32, %arg1: memref<1x18x72xf32, #tpu.memory_space<vmem>>, %arg2: memref<3x72x256xf32, #tpu.memory_space<vmem>>, %arg3: memref<1x16x256xf32, #tpu.memory_space<vmem>>) attributes {dimension_semantics = [#tpu.dimension_semantics<parallel>], iteration_bounds = array<i64: 2>, scalar_prefetch = 0 : i64, scratch_operands = 0 : i64, tpu.core_type = #tpu.core_type<tc>, window_params = [{transform_indices = @transform_0, window_bounds = array<i64: 1, 18, 72>}, {pipeline_mode = #tpu.pipeline_mode<synchronous>, transform_indices = @transform_1, window_bounds = array<i64: 3, 72, 256>}, {transform_indices = @transform_2, window_bounds = array<i64: 1, 16, 256>}]} {
    %c0 = arith.constant 0 : index
    %c0_0 = arith.constant 0 : index
    %c0_1 = arith.constant 0 : index
    %0 = vector.load %arg1[%c0, %c0_0, %c0_1] : memref<1x18x72xf32, #tpu.memory_space<vmem>>, vector<1x16x72xf32>
    %1 = vector.shape_cast %0 : vector<1x16x72xf32> to vector<16x72xf32>
    %c0_2 = arith.constant 0 : index
    %c0_3 = arith.constant 0 : index
    %c0_4 = arith.constant 0 : index
    %2 = vector.load %arg2[%c0_2, %c0_3, %c0_4] : memref<3x72x256xf32, #tpu.memory_space<vmem>>, vector<1x72x256xf32>
    %3 = vector.shape_cast %2 : vector<1x72x256xf32> to vector<72x256xf32>
    %cst = arith.constant dense<0.000000e+00> : vector<16x256xf32>
    %4 = tpu.matmul %1, %3, %cst {dimension_numbers = #tpu.dot_dimension_numbers<[1], [0], [0], [1], [0, 0, 1, 1], [], []>} : vector<16x72xf32>, vector<72x256xf32>, vector<16x256xf32> -> vector<16x256xf32>
    %c0_5 = arith.constant 0 : index
    %c1 = arith.constant 1 : index
    %c0_6 = arith.constant 0 : index
    %5 = vector.load %arg1[%c0_5, %c1, %c0_6] : memref<1x18x72xf32, #tpu.memory_space<vmem>>, vector<1x16x72xf32>
    %6 = vector.shape_cast %5 : vector<1x16x72xf32> to vector<16x72xf32>
    %c1_7 = arith.constant 1 : index
    %c0_8 = arith.constant 0 : index
    %c0_9 = arith.constant 0 : index
    %7 = vector.load %arg2[%c1_7, %c0_8, %c0_9] : memref<3x72x256xf32, #tpu.memory_space<vmem>>, vector<1x72x256xf32>
    %8 = vector.shape_cast %7 : vector<1x72x256xf32> to vector<72x256xf32>
    %cst_10 = arith.constant dense<0.000000e+00> : vector<16x256xf32>
    %9 = tpu.matmul %6, %8, %cst_10 {dimension_numbers = #tpu.dot_dimension_numbers<[1], [0], [0], [1], [0, 0, 1, 1], [], []>} : vector<16x72xf32>, vector<72x256xf32>, vector<16x256xf32> -> vector<16x256xf32>
    %10 = arith.addf %4, %9 : vector<16x256xf32>
    %c0_11 = arith.constant 0 : index
    %c2 = arith.constant 2 : index
    %c0_12 = arith.constant 0 : index
    %11 = vector.load %arg1[%c0_11, %c2, %c0_12] : memref<1x18x72xf32, #tpu.memory_space<vmem>>, vector<1x16x72xf32>
    %12 = vector.shape_cast %11 : vector<1x16x72xf32> to vector<16x72xf32>
    %c2_13 = arith.constant 2 : index
    %c0_14 = arith.constant 0 : index
    %c0_15 = arith.constant 0 : index
    %13 = vector.load %arg2[%c2_13, %c0_14, %c0_15] : memref<3x72x256xf32, #tpu.memory_space<vmem>>, vector<1x72x256xf32>
    %14 = vector.shape_cast %13 : vector<1x72x256xf32> to vector<72x256xf32>
    %cst_16 = arith.constant dense<0.000000e+00> : vector<16x256xf32>
    %15 = tpu.matmul %12, %14, %cst_16 {dimension_numbers = #tpu.dot_dimension_numbers<[1], [0], [0], [1], [0, 0, 1, 1], [], []>} : vector<16x72xf32>, vector<72x256xf32>, vector<16x256xf32> -> vector<16x256xf32>
    %16 = arith.addf %10, %15 : vector<16x256xf32>
    %17 = vector.shape_cast %16 : vector<16x256xf32> to vector<1x16x256xf32>
    %c0_17 = arith.constant 0 : index
    %c0_18 = arith.constant 0 : index
    %c0_19 = arith.constant 0 : index
    %18 = vector.load %arg3[%c0_17, %c0_18, %c0_19] : memref<1x16x256xf32, #tpu.memory_space<vmem>>, vector<1x16x256xf32>
    tpu.vector_store %arg3[%c0_17, %c0_18, %c0_19], %17 {strides = array<i32>} : memref<1x16x256xf32, #tpu.memory_space<vmem>>, vector<1x16x256xf32>,
    return
  }
  func.func @transform_0(%arg0: i32) -> (i32, i32, i32) {
    %c0_i32 = arith.constant 0 : i32
    %c0_i32_0 = arith.constant 0 : i32
    %c0_i32_1 = arith.constant 0 : i32
    return %arg0, %c0_i32, %c0_i32_0 : i32, i32, i32
  }
  func.func @transform_1(%arg0: i32) -> (i32, i32, i32) {
    %c0_i32 = arith.constant 0 : i32
    %c0_i32_0 = arith.constant 0 : i32
    %c0_i32_1 = arith.constant 0 : i32
    %c0_i32_2 = arith.constant 0 : i32
    return %c0_i32, %c0_i32_0, %c0_i32_1 : i32, i32, i32
  }
  func.func @transform_2(%arg0: i32) -> (i32, i32, i32) {
    %c0_i32 = arith.constant 0 : i32
    %c0_i32_0 = arith.constant 0 : i32
    %c0_i32_1 = arith.constant 0 : i32
    return %arg0, %c0_i32, %c0_i32_0 : i32, i32, i32
  }
}

</mosaic_0001>

<bundles_post_ra>
// kernel: transfor_forward.1
= control target key start
LH: loop header
LB: loop body
LE: loop exit
PB: predicated region body
PF: predicated region fallthrough
CT: control target
= control target key end

     0   :  { %s672_s9 = smov 0   ;;  %s885_s0 = inlined_call_operand.vmem [shape: f32[2,18,72], index: 0, kind: input, shape index: {}]   ;;  %s886_s1 = inlined_call_operand.vmem [shape: f32[3,72,256], index: 1, kind: input, shape index: {}]   ;;  %s887_s2 = inlined_call_operand.vmem [shape: f32[2,16,256], index: 2, kind: output, shape index: {}]  }
   0x1 LB: > { %s519_s10 = sadd.s32 4294967295, %s654_s9   ;;  %p523_p0 = scmp.ge.s32.totalorder %s654_s9, 1  ;;  %s654_s9 = sphi %s672_s9, %s12_s9  }
   0x2   : > { %p112_p1 = scmp.lt.s32.totalorder %s654_s9, 3 }
   0x4   : > { %p113_p2 = pnand %p523_p0, %p112_p1 }
   0x5   : > { %v528_v0 = vld [vmem:[%s886_s1 + $0x98] sm:$0xff] (!%p113_p2)  ;;  %v530_v1 = vld [vmem:[%s886_s1 + $0xa8] sm:$0xff] (!%p113_p2)  ;;  %v527_v5 = vld [vmem:[%s886_s1 + $0x90] sm:$0xff] (!%p113_p2)  ;;  %v656_v7 = vmov (!%p113_p2), 0.0   ;;  %p720_p3 = scmp.lt.s32.totalorder (!%p113_p2), %s519_s10, 1  ;;  %vm185_vm0 = vcmask (!%p113_p2), 588800  }
   0x6   : > { %116 = sbr.rel (%p113_p2) target bundleno = 262 (0x106), region = 28  ;;  %v147_v2 = vld [vmem:[%s886_s1 + $0x8] sm:$0xff] (!%p113_p2)  ;;  %v572_v3 = vpack.c.bf16 (!%p113_p2), %v530_v1, %v528_v0  ;;  %v149_v4 = vld [vmem:[%s886_s1 + $0x18] sm:$0xff] (!%p113_p2)  ;;  %v529_v6 = vld [vmem:[%s886_s1 + $0xa0] sm:$0xff] (!%p113_p2)  ;;  %256 = vmatprep.mubr.f32.mxu1 (!%p113_p2), %v656_v7  ;;  %339 = vmatprep.mubr.f32.mxu0 (!%p113_p2), %v656_v7 }
   0x7   : > { %v588_v8 = vpack.c.bf16 (!%p113_p2), %v149_v4, %v147_v2  ;;  %v574_v9 = vpack.c.bf16 (!%p113_p2), %v529_v6, %v527_v5  ;;  %v146_v10 = vld [vmem:[%s886_s1] sm:$0xff] (!%p113_p2)  ;;  %v148_v11 = vld [vmem:[%s886_s1 + $0x10] sm:$0xff] (!%p113_p2)  ;;  %v532_v12 = vld [vmem:[%s886_s1 + $0xb8] sm:$0xff] (!%p113_p2) }
   0x8   : > { %573 = vmatprep.subr.bf16.mxu1 (!%p113_p2), %v572_v3  ;;  %v590_v13 = vpack.c.bf16 (!%p113_p2), %v148_v11, %v146_v10  ;;  %v534_v14 = vld [vmem:[%s886_s1 + $0xc8] sm:$0xff] (!%p113_p2)  ;;  %v153_v16 = vld [vmem:[%s886_s1 + $0x38] sm:$0xff] (!%p113_p2)  ;;  %v531_v19 = vld [vmem:[%s886_s1 + $0xb0] sm:$0xff] (!%p113_p2) }
   0x9   : > { %v151_v15 = vld [vmem:[%s886_s1 + $0x28] sm:$0xff] (!%p113_p2)  ;;  %589 = vmatprep.subr.bf16.mxu0 (!%p113_p2), %v588_v8  ;;  %575 = vmatpush1.bf16.msra.mxu1 (!%p113_p2), %v574_v9  ;;  %v576_v17 = vpack.c.bf16 (!%p113_p2), %v534_v14, %v532_v12  ;;  %v533_v20 = vld [vmem:[%s886_s1 + $0xc0] sm:$0xff] (!%p113_p2)  ;;  %v152_v23 = vld [vmem:[%s886_s1 + $0x30] sm:$0xff] (!%p113_p2) }
   0xa   : > { %v592_v18 = vpack.c.bf16 (!%p113_p2), %v153_v16, %v151_v15  ;;  %v150_v21 = vld [vmem:[%s886_s1 + $0x20] sm:$0xff] (!%p113_p2)  ;;  %591 = vmatpush1.bf16.msra.mxu0 (!%p113_p2), %v590_v13  ;;  %v578_v22 = vpack.c.bf16 (!%p113_p2), %v533_v20, %v531_v19  ;;  %v536_v24 = vld [vmem:[%s886_s1 + $0xd8] sm:$0xff] (!%p113_p2)  ;;  %v538_v25 = vld [vmem:[%s886_s1 + $0xe8] sm:$0xff] (!%p113_p2) }
   0xb   : > { %577 = vmatprep.subr.bf16.mxu1 (!%p113_p2), %v576_v17  ;;  %v594_v26 = vpack.c.bf16 (!%p113_p2), %v152_v23, %v150_v21  ;;  %v580_v27 = vpack.c.bf16 (!%p113_p2), %v538_v25, %v536_v24  ;;  %v155_v28 = vld [vmem:[%s886_s1 + $0x48] sm:$0xff] (!%p113_p2)  ;;  %v157_v29 = vld [vmem:[%s886_s1 + $0x58] sm:$0xff] (!%p113_p2)  ;;  %v535_v30 = vld [vmem:[%s886_s1 + $0xd0] sm:$0xff] (!%p113_p2) }
   0xc   : > { %593 = vmatprep.subr.bf16.mxu0 (!%p113_p2), %v592_v18  ;;  %v596_v31 = vpack.c.bf16 (!%p113_p2), %v157_v29, %v155_v28  ;;  %v537_v32 = vld [vmem:[%s886_s1 + $0xe0] sm:$0xff] (!%p113_p2)  ;;  %v156_v34 = vld [vmem:[%s886_s1 + $0x50] sm:$0xff] (!%p113_p2)  ;;  %v540_v36 = vld [vmem:[%s886_s1 + $0xf8] sm:$0xff] (!%p113_p2) }
   0xd   : > { %v154_v33 = vld [vmem:[%s886_s1 + $0x40] sm:$0xff]  ;;  %s890_s10 = smov (!%p720_p3, %s519_s10), 1  ;;  %579 = vmatpush1.bf16.msra.mxu1 %v578_v22  ;;  %v582_v35 = vpack.c.bf16 %v537_v32, %v535_v30  ;;  %v542_v37 = vld [vmem:[%s886_s1 + $0x108] sm:$0xff]  ;;  %v161_v41 = vld [vmem:[%s886_s1 + $0x78] sm:$0xff] }
   0xe   : > { %v159_v38 = vld [vmem:[%s886_s1 + $0x68] sm:$0xff]  ;;  %595 = vmatpush1.bf16.msra.mxu0 %v594_v26  ;;  %581 = vmatprep.subr.bf16.mxu1 %v580_v27  ;;  %v598_v39 = vpack.c.bf16 %v156_v34, %v154_v33  ;;  %v584_v40 = vpack.c.bf16 %v542_v37, %v540_v36  ;;  %v539_v42 = vld [vmem:[%s886_s1 + $0xf0] sm:$0xff]  ;;  %v541_v43 = vld [vmem:[%s886_s1 + $0x100] sm:$0xff]  ;;  %s638_s24 = smul.u32 24, %s890_s10  ;;  %s571_s21 = sshll.u32 %s890_s10, 5 }
   0xf   : > { %597 = vmatprep.subr.bf16.mxu0 %v596_v31  ;;  %v600_v44 = vpack.c.bf16 %v161_v41, %v159_v38  ;;  %v158_v45 = vld [vmem:[%s886_s1 + $0x60] sm:$0xff]  ;;  %v160_v46 = vld [vmem:[%s886_s1 + $0x70] sm:$0xff]  ;;  %v586_v47 = vpack.c.bf16 %v541_v43, %v539_v42  ;;  %v544_v49 = vld [vmem:[%s886_s1 + $0x118] sm:$0xff] }
  0x10   : > { %v602_v48 = vpack.c.bf16 %v160_v46, %v158_v45  ;;  %v163_v50 = vld [vmem:[%s886_s1 + $0x88] sm:$0xff]  ;;  %s800_s3 = scalar_lea.vmem %s885_s0, %s638_s24  ;;  %v552_v52 = vld [vmem:[%s886_s1 + $0x138] sm:$0xff]  ;;  %v549_v53 = vld [vmem:[%s886_s1 + $0x120] sm:$0xff]  ;;  %s143_s24 = scalar_lea.vmem %s887_s2, %s571_s21 }
  0x11   : > { %583 = vmatpush1.bf16.msra.mxu1 %v582_v35  ;;  %v550_v51 = vld [vmem:[%s886_s1 + $0x128] sm:$0xff]  ;;  %v551_v54 = vld [vmem:[%s886_s1 + $0x130] sm:$0xff]  ;;  %v556_v57 = vld [vmem:[%s886_s1 + $0x158] sm:$0xff] }
  0x12   : > { %599 = vmatpush1.bf16.msra.mxu0 %v598_v39  ;;  %585 = vmatprep.subr.bf16.mxu1 %v584_v40  ;;  %v543_v55 = vld [vmem:[%s886_s1 + $0x110] sm:$0xff]  ;;  %v554_v56 = vld [vmem:[%s886_s1 + $0x148] sm:$0xff]  ;;  %v162_v58 = vld [vmem:[%s886_s1 + $0x80] sm:$0xff]  ;;  %v604_v60 = vpack.c.bf16 %v552_v52, %v550_v51  ;;  %v606_v61 = vpack.c.bf16 %v551_v54, %v549_v53 }
  0x13   : > { %601 = vmatprep.subr.bf16.mxu0 %v600_v44  ;;  %v164_v59 = vld [vmem:[%s800_s3 + $0x1] sm:$0xff]  ;;  %v608_v63 = vpack.c.bf16 %v556_v57, %v554_v56  ;;  %v555_v1 = vld [vmem:[%s886_s1 + $0x150] sm:$0xff]  ;;  %v560_v3 = vld [vmem:[%s886_s1 + $0x178] sm:$0xff] }
  0x14   : > { %v144_v62 = vld [vmem:[%s800_s3] sm:$0xff]  ;;  %v558_v2 = vld [vmem:[%s886_s1 + $0x168] sm:$0xff]  ;;  %v559_v9 = vld [vmem:[%s886_s1 + $0x170] sm:$0xff] }
  0x15   : > { %587 = vmatpush1.bf16.msra.mxu1 %v586_v47  ;;  %v553_v0 = vld [vmem:[%s886_s1 + $0x140] sm:$0xff]  ;;  %v165_v5 = vld [vmem:[%s800_s3 + $0x9] sm:$0xff]  ;;  %v612_v6 = vpack.c.bf16 %v560_v3, %v558_v2  ;;  %v564_v12 = vld [vmem:[%s886_s1 + $0x198] sm:$0xff] }
  0x16   : > { %603 = vmatpush1.bf16.msra.mxu0 %v602_v48  ;;  %208 = vmatprep.subr.mxu1 %v544_v49  ;;  %v610_v4 = vpack.c.bf16 %v555_v1, %v553_v0  ;;  %v557_v8 = vld [vmem:[%s886_s1 + $0x160] sm:$0xff]  ;;  %v145_v10 = vld [vmem:[%s800_s3 + $0x8] sm:$0xff]  ;;  %v563_v16 = vld [vmem:[%s886_s1 + $0x190] sm:$0xff] }
  0x17   : > { %291 = vmatprep.subr.mxu0 %v163_v50  ;;  %v562_v11 = vld [vmem:[%s886_s1 + $0x188] sm:$0xff]  ;;  %v614_v13 = vpack.c.bf16 %v559_v9, %v557_v8  ;;  %v561_v15 = vld [vmem:[%s886_s1 + $0x180] sm:$0xff] }
  0x18   : > { %v616_v14 = vpack.c.bf16 %v564_v12, %v562_v11  ;;  %v618_v17 = vpack.c.bf16 %v563_v16, %v561_v15  ;;  %v566_v18 = vld [vmem:[%s886_s1 + $0x1a8] sm:$0xff]  ;;  %v565_v19 = vld [vmem:[%s886_s1 + $0x1a0] sm:$0xff] }
  0x19   : > { %209 = vmatpush1.msra.mxu1 %v543_v55  ;;  %v353_v20 = vld [vmem:[%s800_s3 + $0xa] sm:$0xff] }
  0x1a   : > { %292 = vmatpush1.msra.mxu0 %v162_v58  ;;  %545 = vmatmul.mubr.msk.f32.vlgmr.msra.gmra.mrb[0].mxu1 %vm185_vm0, %v164_v59 }
  0x1b   : > { %605 = vmatprep.subr.bf16.mxu0 %v604_v60  ;;  %620 = vmatprep.subr.bf16.mxu1 %v604_v60 }
  0x1c   : > { %547 = vmatmul.mubr.msk.f32.vlgmr.msra.gmra.mrb[0].mxu0 %vm185_vm0, %v144_v62  ;;  %625 = vmatpush1.bf16.msra.mxu1 %v606_v61 }
  0x1d   : > { %607 = vmatpush1.bf16.msra.mxu0 %v606_v61  ;;  %621 = vmatprep.subr.bf16.mxu1 %v608_v63 }
  0x1e   : > { %609 = vmatprep.subr.bf16.mxu0 %v608_v63  ;;  %262 = vmatprep.mubr.f32.mxu1 %v656_v7 }
  0x1f   : > { %345 = vmatprep.mubr.f32.mxu0 %v656_v7  ;;  %546 = vmatmul.mubr.msk.f32.gmra.mrb[2].mxu1 %vm185_vm0, %v165_v5 }
  0x20   : > { %626 = vmatpush1.bf16.msra.mxu1 %v610_v4  ;;  %548 = vmatmul.mubr.msk.f32.gmra.mrb[2].mxu0 %vm185_vm0, %v145_v10 }
  0x21   : > { %611 = vmatpush1.bf16.msra.mxu0 %v610_v4  ;;  %622 = vmatprep.subr.bf16.mxu1 %v612_v6 }
  0x22   : > { %613 = vmatprep.subr.bf16.mxu0 %v612_v6  ;;  %443 = vmatprep.mubr.f32.mxu0 %v656_v7 }
  0x23   : > { %449 = vmatprep.mubr.f32.mxu1 %v656_v7  ;;  %v352_v7 = vld [vmem:[%s800_s3 + $0x2] sm:$0xff] }
  0x24   : > { %627 = vmatpush1.bf16.msra.mxu1 %v614_v13 }
  0x25   : > { %615 = vmatpush1.bf16.msra.mxu0 %v614_v13  ;;  %623 = vmatprep.subr.bf16.mxu1 %v616_v14 }
  0x26   : > { %617 = vmatprep.subr.bf16.mxu0 %v616_v14 }
  0x28   : > { %628 = vmatpush1.bf16.msra.mxu1 %v618_v17 }
  0x29   : > { %619 = vmatpush1.bf16.msra.mxu0 %v618_v17  ;;  %624 = vmatprep.subr.mxu1 %v566_v18 }
  0x2a   : > { %395 = vmatprep.subr.mxu0 %v566_v18 }
  0x2c   : > { %629 = vmatpush1.msra.mxu1 %v565_v19 }
  0x2d   : > { %396 = vmatpush1.msra.mxu0 %v565_v19  ;;  %568 = vmatmul.mubr.msk.f32.vlgmr.msra.gmra.mrb[4].mxu1 %vm185_vm0, %v353_v20 }
  0x2e   : > { %567 = vmatmul.mubr.msk.f32.vlgmr.msra.gmra.mrb[0].mxu0 %vm185_vm0, %v352_v7 }
  0xed   : > { %v258_v21 = vpop.f32.mrb[0].mxu1 }
  0xee   : > { %v260_v22 = vpop.f32.mrb[1].mxu1 }
  0xf2   : > { %v264_v23 = vpop.f32.mrb[2].mxu1 }
  0xf3   : > { %v347_v24 = vpop.f32.mrb[2].mxu0  ;;  %v266_v25 = vpop.f32.mrb[3].mxu1 }
  0xf4   : > { %v348_v26 = vadd.f32 %v347_v24, %v264_v23  ;;  %v349_v27 = vpop.f32.mrb[3].mxu0 }
  0xf5   : > { %v350_v28 = vadd.f32 %v349_v27, %v266_v25 }
 0x100   : > { %v451_v29 = vpop.f32.mrb[4].mxu1 }
 0x101   : > { %v445_v30 = vpop.f32.mrb[0].mxu0  ;;  %v458_v31 = vadd.f32 %v451_v29, %v348_v26  ;;  %v453_v32 = vpop.f32.mrb[5].mxu1 }
 0x102   : > { %v630_v33 = vadd.f32 %v445_v30, %v258_v21  ;;  %v447_v34 = vpop.f32.mrb[1].mxu0  ;;  %v459_v35 = vadd.f32 %v453_v32, %v350_v28 }
 0x103   : > { %462 = vst [vmem:[%s143_s24 + $0x10] sm:$0xff] %v458_v31  ;;  %v631_v36 = vadd.f32 %v447_v34, %v260_v22 }
 0x104   : > { %460 = vst [vmem:[%s143_s24] sm:$0xff] %v630_v33  ;;  %463 = vst [vmem:[%s143_s24 + $0x18] sm:$0xff] %v459_v35 }
 0x105   : > { %461 = vst [vmem:[%s143_s24 + $0x8] sm:$0xff] %v631_v36 }
 0x106 PF: > { %s12_s9 = sadd.s32 1, %s654_s9  }
 0x107   : > { %p9_p4 = scmp.ge.s32.totalorder %s12_s9, 4  }
 0x109   :  { %11 = sbr.rel (!%p9_p4) target bundleno = 1 (0x1), region = 60 }

</bundles_post_ra>
